<compile_context>
chip_gen: v5e
topology: v5e:2x2
jax: 0.10.0
libtpu: 0.0.40
codegen_flags: <defaults>
</compile_context>

<pallas_src>
import jax
import jax.numpy as jnp
from jax import lax
from jax.experimental import pallas as pl
from jax.experimental.pallas import tpu as pltpu

N_TENSE = 4
COND_EMB_DIM = 8
PAD_ID = 0
DROPOUT_P = 0.1


def _wrap_i32(x):
    """Wrap a python int into signed-int32 two's-complement range (plain python int)."""
    x &= 0xFFFFFFFF
    return x - (1 << 32) if x >= (1 << 31) else x


_GOLDEN_I = _wrap_i32(0x9E3779B1)
_C1_I = _wrap_i32(0x7FEB352D)
_C2_I = _wrap_i32(0x846CA68B)
_DROP_THRESH_24 = int(round(DROPOUT_P * (1 << 24)))  # drop iff hash24 < p * 2^24
_KEEP_SCALE = 1.0 / (1.0 - DROPOUT_P)


# --------------------------------------------------------------------------------------
# Kernels
# --------------------------------------------------------------------------------------
def _cond_embed_eval_kernel(idx_ref, emb_ref, out_ref):
    # idx_ref : SMEM int32[1]  (tense index, scalar prefetch)
    # emb_ref : VMEM (N_TENSE, COND_EMB_DIM) -- full table (128 B), static-address DMA
    # out_ref : VMEM (1, 1, COND_EMB_DIM)
    out_ref[0] = emb_ref[pl.ds(idx_ref[0], 1), :]          # lookup + store, nothing else


def _cond_embed_train_kernel(idx_ref, seed_ref, emb_ref, out_ref):
    # idx_ref  : SMEM int32[1]  (tense index)
    # seed_ref : SMEM int32[1]  (dropout seed)
    # emb_ref  : VMEM (N_TENSE, COND_EMB_DIM)
    # out_ref  : VMEM (1, 1, COND_EMB_DIM)
    row = emb_ref[pl.ds(idx_ref[0], 1), :]                  # (1, COND_EMB_DIM) f32

    # splitmix32-style hash over (seed, lane position) -> uniform 24-bit integers
    j = lax.broadcasted_iota(jnp.int32, (1, COND_EMB_DIM), 1)
    x = seed_ref[0] + j * jnp.int32(_GOLDEN_I)
    x = x ^ lax.shift_right_logical(x, 16)
    x = x * jnp.int32(_C1_I)
    x = x ^ lax.shift_right_logical(x, 15)
    x = x * jnp.int32(_C2_I)
    x = x ^ lax.shift_right_logical(x, 16)
    r24 = lax.shift_right_logical(x, 8)                     # [0, 2^24)

    keep = r24 >= jnp.int32(_DROP_THRESH_24)
    # single select: kept lanes scaled by 1/(1-p), dropped lanes zeroed
    out_ref[0] = jnp.where(keep, row * jnp.float32(_KEEP_SCALE), jnp.float32(0.0))


# --------------------------------------------------------------------------------------
# pallas_call wrappers (training specialized at compile time)
# --------------------------------------------------------------------------------------
_OUT_SHAPE = jax.ShapeDtypeStruct((1, 1, COND_EMB_DIM), jnp.float32)

_EVAL_CALL = pl.pallas_call(
    _cond_embed_eval_kernel,
    out_shape=_OUT_SHAPE,
    grid_spec=pltpu.PrefetchScalarGridSpec(
        num_scalar_prefetch=1,
        grid=(1,),
        in_specs=[pl.BlockSpec((N_TENSE, COND_EMB_DIM), lambda i, idx: (0, 0))],
        out_specs=pl.BlockSpec((1, 1, COND_EMB_DIM), lambda i, idx: (0, 0, 0)),
    ),
    compiler_params=pltpu.CompilerParams(dimension_semantics=("arbitrary",)),
)

_TRAIN_CALL = pl.pallas_call(
    _cond_embed_train_kernel,
    out_shape=_OUT_SHAPE,
    grid_spec=pltpu.PrefetchScalarGridSpec(
        num_scalar_prefetch=2,
        grid=(1,),
        in_specs=[pl.BlockSpec((N_TENSE, COND_EMB_DIM), lambda i, idx, seed: (0, 0))],
        out_specs=pl.BlockSpec((1, 1, COND_EMB_DIM), lambda i, idx, seed: (0, 0, 0)),
    ),
    compiler_params=pltpu.CompilerParams(dimension_semantics=("arbitrary",)),
)


def init_params(key):
    """Matches nn.Embedding(N_TENSE, COND_EMB_DIM, padding_idx=PAD_ID) shapes/semantics."""
    emb = jax.random.normal(key, (N_TENSE, COND_EMB_DIM), jnp.float32)
    emb = emb.at[PAD_ID].set(0.0)  # padding_idx row is zero (forward semantics)
    # TODO(synk): if the table is trained, gradient masking of the pad row is handled
    # outside this kernel.
    return {"embedding": emb}


def cond_embed_forward(params, tense_idx, *, dropout_seed=0, training=True):
    """input: scalar int tense index. returns (1, 1, COND_EMB_DIM) float32,
    i.e. embedding(input).view(1,1,-1) passed through Dropout(p=0.1)."""
    idx = jnp.asarray(tense_idx, jnp.int32).reshape((1,))
    if training:
        seed = jnp.asarray(dropout_seed, jnp.int32).reshape((1,))
        return _TRAIN_CALL(idx, seed, params["embedding"])
    return _EVAL_CALL(idx, params["embedding"])


if __name__ == "__main__":
    key = jax.random.PRNGKey(0)
    params = init_params(key)
    tense_idx = 2

    # --- eval mode: dropout is identity, must equal the raw embedding row exactly ---
    out_eval = cond_embed_forward(params, tense_idx, training=False)
    jax.block_until_ready(out_eval)
    ref_row = params["embedding"][tense_idx]
    assert out_eval.shape == (1, 1, COND_EMB_DIM), "bad output shape"
    assert jnp.allclose(out_eval.reshape(-1), ref_row, atol=1e-6), "eval-mode mismatch"

    # --- train mode: every element is either 0 (dropped) or row/(1-p) (kept + rescaled) ---
    out_train = cond_embed_forward(params, tense_idx, dropout_seed=123, training=True)
    jax.block_until_ready(out_train)
    v = out_train.reshape(-1)
    scaled = ref_row / (1.0 - DROPOUT_P)
    ok = jnp.logical_or(jnp.isclose(v, 0.0, atol=1e-6), jnp.isclose(v, scaled, atol=1e-5))
    assert bool(jnp.all(ok)), "train-mode dropout semantics violated"

    # --- different seeds are valid masks too (deterministic per seed) ---
    out_train2 = cond_embed_forward(params, tense_idx, dropout_seed=7, training=True)
    jax.block_until_ready(out_train2)
    v2 = out_train2.reshape(-1)
    ok2 = jnp.logical_or(jnp.isclose(v2, 0.0, atol=1e-6), jnp.isclose(v2, scaled, atol=1e-5))
    assert bool(jnp.all(ok2)), "train-mode dropout semantics violated (seed 7)"

    # --- padding_idx row lookup stays all-zero ---
    out_pad = cond_embed_forward(params, PAD_ID, training=False)
    jax.block_until_ready(out_pad)
    assert jnp.allclose(out_pad, 0.0), "padding_idx row not zero"

    print("KERNEL_OK")
</pallas_src>

<mosaic_0001>
module attributes {stable_mosaic.version = 11 : i64} {
  func.func @_cond_embed_eval_kernel(%arg0: i32, %arg1: memref<1xi32, #tpu.memory_space<smem>>, %arg2: memref<4x8xf32, #tpu.memory_space<vmem>>, %arg3: memref<1x1x8xf32, #tpu.memory_space<vmem>>) attributes {dimension_semantics = [#tpu.dimension_semantics<arbitrary>], iteration_bounds = array<i64: 1>, scalar_prefetch = 1 : i64, scratch_operands = 0 : i64, tpu.core_type = #tpu.core_type<tc>, window_params = [{pipeline_mode = #tpu.pipeline_mode<synchronous>, transform_indices = @transform_0, window_bounds = array<i64: 4, 8>}, {pipeline_mode = #tpu.pipeline_mode<synchronous>, transform_indices = @transform_1, window_bounds = array<i64: 1, 1, 8>}]} {
    %c0 = arith.constant 0 : index
    %0 = memref.load %arg1[%c0] : memref<1xi32, #tpu.memory_space<smem>>
    %1 = arith.index_cast %0 : i32 to index
    %c0_0 = arith.constant 0 : index
    %2 = vector.load %arg2[%1, %c0_0] : memref<4x8xf32, #tpu.memory_space<vmem>>, vector<1x8xf32>
    %c0_1 = arith.constant 0 : index
    %c0_2 = arith.constant 0 : index
    %c0_3 = arith.constant 0 : index
    %3 = vector.load %arg3[%c0_1, %c0_2, %c0_3] : memref<1x1x8xf32, #tpu.memory_space<vmem>>, vector<1x1x8xf32>
    %4 = vector.shape_cast %3 : vector<1x1x8xf32> to vector<1x8xf32>
    %5 = vector.shape_cast %2 : vector<1x8xf32> to vector<1x1x8xf32>
    tpu.vector_store %arg3[%c0_1, %c0_2, %c0_3], %5 {strides = array<i32>} : memref<1x1x8xf32, #tpu.memory_space<vmem>>, vector<1x1x8xf32>,
    return
  }
  func.func @transform_0(%arg0: i32, %arg1: memref<1xi32, #tpu.memory_space<smem>>) -> (i32, i32) {
    %c0_i32 = arith.constant 0 : i32
    %c0_i32_0 = arith.constant 0 : i32
    %c0_i32_1 = arith.constant 0 : i32
    return %c0_i32, %c0_i32_0 : i32, i32
  }
  func.func @transform_1(%arg0: i32, %arg1: memref<1xi32, #tpu.memory_space<smem>>) -> (i32, i32, i32) {
    %c0_i32 = arith.constant 0 : i32
    %c0_i32_0 = arith.constant 0 : i32
    %c0_i32_1 = arith.constant 0 : i32
    %c0_i32_2 = arith.constant 0 : i32
    return %c0_i32, %c0_i32_0, %c0_i32_1 : i32, i32, i32
  }
}

</mosaic_0001>

<bundles_post_ra>
// kernel: tpu_custom_call.1
= control target key start
LH: loop header
LB: loop body
LE: loop exit
PB: predicated region body
PF: predicated region fallthrough
CT: control target
= control target key end

     0   :  { %8 = vsyncpa [#allocation5], 0  ;;  %s128_s0 = inlined_call_operand.<no memory space> [shape: s32[1], index: 0, kind: input, shape index: {}]   ;;  %s129_s1 = inlined_call_operand.hbm [shape: f32[4,8], index: 1, kind: input, shape index: {}]   ;;  %s130_s2 = inlined_call_operand.hbm [shape: f32[1,1,8], index: 2, kind: output, shape index: {}]  }
   0x1   :  { %9 = vsyncpa [#allocation6], 0  ;;  %s15_s11 = sshll.u32 %s129_s1, 4  ;;  %s102_s12 = smov [#allocation4]   ;;  %s16_s11 = int_to_ptr.hbm [resolvable:$true] %s15_s11 }
   0x2   :  { %s17_s13 = sshll.u32 %s102_s12, 4  ;;  %s18_s13 = int_to_ptr.vmem [resolvable:$true] %s17_s13 }
   0x3   :  { %20 = dma.hbm_to_vmem [thread:$0]  %s16_s11, 64, %s18_s13, [#allocation5]  }
   0x4   :  { %98 = dma.done.wait [#allocation5], 64  }
   0x5   :  { %99 = vsyncadd [#allocation5], 4294967232  ;;  %s103_s14 = smov [#allocation7]   ;;  %s37_s18 = sshll.u32 %s130_s2, 4  ;;  %vm28_vm0 = vcmask 57344   ;;  %s38_s18 = int_to_ptr.hbm [resolvable:$true] %s37_s18 }
   0x6   :  { %s35_s15 = sshll.u32 %s103_s14, 4  ;;  %s26_s1 = scalar_lea.vmem [#allocation4], %s128_s0  ;;  %s36_s15 = int_to_ptr.vmem [resolvable:$true] %s35_s15 }
   0x7   :  { %v27_v0 = vld [vmem:[%s26_s1] sm:$0x1] }
   0x8   :  { %29 = vst.msk [vmem:[#allocation7] sm:$0x1] %vm28_vm0, %v27_v0 }
   0x9   :  { %40 = dma.vmem_to_hbm [thread:$0]  %s36_s15, 16, %s38_s18, [#allocation6]  }
   0xa   :  { %100 = dma.done.wait [#allocation6], 16  }
   0xb   :  { %101 = vsyncadd [#allocation6], 4294967280 }
   0xc   :  { %45 = vsyncpa [#allocation5], 1 }
   0xd   :  { %46 = vsyncpa [#allocation6], 1 }

</bundles_post_ra>
